<compile_context>
chip_gen: v7x
topology: tpu7x:2x2x1
jax: 0.10.0
libtpu: 0.0.40
codegen_flags: <defaults>
</compile_context>

<pallas_src>
import math
from functools import partial

import jax
import jax.numpy as jnp
from jax import lax
from jax.experimental import pallas as pl
from jax.experimental.pallas import tpu as pltpu


# ----------------------------------------------------------------------------
# Fused FFN kernel:  o = GELU(x @ w_fi) @ w_out
#   x_ref   : (tm, C)   bf16
#   wfi_ref : (C, th)   bf16   (to_fi weight, pre-transposed to (in, out))
#   wout_ref: (th, C)   bf16   (to_out weight, pre-transposed to (in, out))
#   o_ref   : (tm, C)   out dtype
#   acc_ref : (tm, C)   f32 scratch accumulator (resident across the h axis)
# ----------------------------------------------------------------------------
def _ffn_kernel(x_ref, wfi_ref, wout_ref, o_ref, acc_ref):
    h_idx = pl.program_id(1)

    @pl.when(h_idx == 0)
    def _init():
        acc_ref[...] = jnp.zeros_like(acc_ref)

    # GEMM 1 (partial over the hidden chunk), f32 accumulation on the MXU.
    h = jnp.dot(x_ref[...], wfi_ref[...], preferred_element_type=jnp.float32)
    # Exact (erf) GELU in f32 — matches torch.nn.GELU() default.
    h = 0.5 * h * (1.0 + lax.erf(h * (1.0 / math.sqrt(2.0))))
    # GEMM 2 partial contraction of this hidden chunk into the output acc.
    acc_ref[...] += jnp.dot(
        h.astype(wout_ref.dtype), wout_ref[...],
        preferred_element_type=jnp.float32,
    )

    @pl.when(h_idx == pl.num_programs(1) - 1)
    def _finalize():
        o_ref[...] = acc_ref[...].astype(o_ref.dtype)


def _round_up(a, b):
    return (a + b - 1) // b * b


def _pick_hidden_tile(H, pref):
    """Largest tile <= pref that divides H and is a multiple of 128
    (falls back to full H for tiny problems)."""
    if H <= pref:
        return H
    t = pref
    while t >= 128:
        if H % t == 0:
            return t
        t //= 2
    return H


# ----------------------------------------------------------------------------
# Module forward:  x -> to_fi -> GELU -> to_out -> dropout(p=0) -> y
# ----------------------------------------------------------------------------
def feed_forward(x, params, *, tm_pref=256, th_pref=512):
    """x: (B, T, C) float32.  params:
         w_fi : (C, 4C)  bf16  -- to_fi weight, (in, out) layout
         w_out: (4C, C)  bf16  -- to_out weight, (in, out) layout
       bias=False in ModelArgs, so there are no bias terms."""
    B, T, C = x.shape
    w_fi, w_out = params["w_fi"], params["w_out"]
    H = w_fi.shape[1]
    assert w_fi.shape == (C, H) and w_out.shape == (H, C)
    compute_dtype = w_fi.dtype
    out_dtype = x.dtype

    M = B * T
    x2d = x.reshape(M, C).astype(compute_dtype)

    # M tile: multiple of 16 (bf16 sublane packing); pad M instead of falling
    # back to a giant full-extent block.
    tm = min(tm_pref, _round_up(M, 16))
    M_pad = _round_up(M, tm)
    if M_pad > M:
        x2d = jnp.pad(x2d, ((0, M_pad - M), (0, 0)))

    th = _pick_hidden_tile(H, th_pref)
    grid = (M_pad // tm, H // th)

    cost = pl.CostEstimate(
        flops=4 * M_pad * H * C,            # two GEMMs
        transcendentals=M_pad * H,          # erf
        bytes_accessed=(x2d.size * x2d.dtype.itemsize
                        + w_fi.size * w_fi.dtype.itemsize
                        + w_out.size * w_out.dtype.itemsize
                        + M_pad * C * jnp.dtype(out_dtype).itemsize),
    )

    out = pl.pallas_call(
        _ffn_kernel,
        out_shape=jax.ShapeDtypeStruct((M_pad, C), out_dtype),
        grid_spec=pltpu.PrefetchScalarGridSpec(
            num_scalar_prefetch=0,
            grid=grid,
            in_specs=[
                pl.BlockSpec((tm, C), lambda i, h: (i, 0)),   # x tile
                pl.BlockSpec((C, th), lambda i, h: (0, h)),   # w_fi chunk
                pl.BlockSpec((th, C), lambda i, h: (h, 0)),   # w_out chunk
            ],
            out_specs=pl.BlockSpec((tm, C), lambda i, h: (i, 0)),
            scratch_shapes=[pltpu.VMEM((tm, C), jnp.float32)],
        ),
        compiler_params=pltpu.CompilerParams(
            dimension_semantics=("parallel", "arbitrary"),
        ),
        cost_estimate=cost,
    )(x2d, w_fi, w_out)

    # dropout p=0.0 -> identity (eval-mode semantics of the reference forward)
    return out[:M].reshape(B, T, C)


def init_params(key, n_embd, dtype=jnp.bfloat16):
    """nn.Linear default init U(-1/sqrt(in), 1/sqrt(in)), stored pre-transposed
    in (Cin, Cout) layout (no transpose in the forward) and cast to bf16 so the
    MXU runs at its bf16 peak."""
    hidden = 4 * n_embd
    k_fi, k_out = jax.random.split(key, 2)
    b_fi = 1.0 / math.sqrt(n_embd)
    b_out = 1.0 / math.sqrt(hidden)
    w_fi = jax.random.uniform(
        k_fi, (n_embd, hidden), dtype=jnp.float32, minval=-b_fi, maxval=b_fi
    )
    w_out = jax.random.uniform(
        k_out, (hidden, n_embd), dtype=jnp.float32, minval=-b_out, maxval=b_out
    )
    return {"w_fi": w_fi.astype(dtype), "w_out": w_out.astype(dtype)}


if __name__ == "__main__":
    B, T, n_embd = 2, 8, 32  # hidden = 128

    key = jax.random.PRNGKey(0)
    kx, kp = jax.random.split(key)
    x = jax.random.normal(kx, (B, T, n_embd), dtype=jnp.float32)
    params = init_params(kp, n_embd)

    y = feed_forward(x, params)
    jax.block_until_ready(y)
    assert y.shape == (B, T, n_embd)

    # Correctness check against a pure-JAX reference that uses the same
    # bf16-input / f32-accumulate / f32-GELU numerics as the kernel.
    x2d = x.reshape(B * T, n_embd).astype(jnp.bfloat16).astype(jnp.float32)
    w_fi = params["w_fi"].astype(jnp.float32)
    w_out = params["w_out"].astype(jnp.float32)
    h_ref = x2d @ w_fi
    h_ref = 0.5 * h_ref * (1.0 + lax.erf(h_ref / math.sqrt(2.0)))
    h_ref = h_ref.astype(jnp.bfloat16).astype(jnp.float32)
    y_ref = (h_ref @ w_out).reshape(B, T, n_embd)
    assert jnp.allclose(y, y_ref, atol=1e-2, rtol=1e-2), (
        float(jnp.max(jnp.abs(y - y_ref)))
    )

    print("KERNEL_OK")
</pallas_src>

<mosaic_0001>
module attributes {stable_mosaic.version = 11 : i64} {
  func.func @_ffn_kernel(%arg0: i32, %arg1: i32, %arg2: memref<16x32xbf16, #tpu.memory_space<vmem>>, %arg3: memref<32x128xbf16, #tpu.memory_space<vmem>>, %arg4: memref<128x32xbf16, #tpu.memory_space<vmem>>, %arg5: memref<16x32xf32, #tpu.memory_space<vmem>>, %arg6: memref<16x32xf32, #tpu.memory_space<vmem>>) attributes {dimension_semantics = [#tpu.dimension_semantics<parallel>, #tpu.dimension_semantics<arbitrary>], iteration_bounds = array<i64: 1, 1>, scalar_prefetch = 0 : i64, scratch_operands = 1 : i64, tpu.core_type = #tpu.core_type<tc>, window_params = [{transform_indices = @transform_0, window_bounds = array<i64: 16, 32>}, {transform_indices = @transform_1, window_bounds = array<i64: 32, 128>}, {transform_indices = @transform_2, window_bounds = array<i64: 128, 32>}, {transform_indices = @transform_3, window_bounds = array<i64: 16, 32>}]} {
    %c0_i32 = arith.constant 0 : i32
    %0 = arith.cmpi eq, %arg1, %c0_i32 : i32
    %1 = arith.extui %0 : i1 to i32
    %c0_i32_0 = arith.constant 0 : i32
    %2 = arith.cmpi ne, %1, %c0_i32_0 : i32
    scf.if %2 {
      %cst_16 = arith.constant 0.000000e+00 : f32
      %23 = vector.broadcast %cst_16 : f32 to vector<16x32xf32>
      %c0_17 = arith.constant 0 : index
      %c0_18 = arith.constant 0 : index
      %24 = vector.load %arg6[%c0_17, %c0_18] : memref<16x32xf32, #tpu.memory_space<vmem>>, vector<16x32xf32>
      tpu.vector_store %arg6[%c0_17, %c0_18], %23 {strides = array<i32>} : memref<16x32xf32, #tpu.memory_space<vmem>>, vector<16x32xf32>,
    } else {
    }
    %c0 = arith.constant 0 : index
    %c0_1 = arith.constant 0 : index
    %3 = vector.load %arg2[%c0, %c0_1] : memref<16x32xbf16, #tpu.memory_space<vmem>>, vector<16x32xbf16>
    %c0_2 = arith.constant 0 : index
    %c0_3 = arith.constant 0 : index
    %4 = vector.load %arg3[%c0_2, %c0_3] : memref<32x128xbf16, #tpu.memory_space<vmem>>, vector<32x128xbf16>
    %cst = arith.constant dense<0.000000e+00> : vector<16x128xf32>
    %5 = tpu.matmul %3, %4, %cst {dimension_numbers = #tpu.dot_dimension_numbers<[1], [0], [0], [1], [0, 0, 1, 1], [], []>} : vector<16x32xbf16>, vector<32x128xbf16>, vector<16x128xf32> -> vector<16x128xf32>
    %cst_4 = arith.constant 5.000000e-01 : f32
    %6 = vector.broadcast %cst_4 : f32 to vector<16x128xf32>
    %7 = arith.mulf %6, %5 : vector<16x128xf32>
    %cst_5 = arith.constant 0.707106769 : f32
    %8 = vector.broadcast %cst_5 : f32 to vector<16x128xf32>
    %9 = arith.mulf %5, %8 : vector<16x128xf32>
    %10 = math.erf %9 : vector<16x128xf32>
    %cst_6 = arith.constant 1.000000e+00 : f32
    %11 = vector.broadcast %cst_6 : f32 to vector<16x128xf32>
    %12 = arith.addf %11, %10 : vector<16x128xf32>
    %13 = arith.mulf %7, %12 : vector<16x128xf32>
    %c0_7 = arith.constant 0 : index
    %c0_8 = arith.constant 0 : index
    %14 = vector.load %arg6[%c0_7, %c0_8] : memref<16x32xf32, #tpu.memory_space<vmem>>, vector<16x32xf32>
    %15 = arith.truncf %13 : vector<16x128xf32> to vector<16x128xbf16>
    %c0_9 = arith.constant 0 : index
    %c0_10 = arith.constant 0 : index
    %16 = vector.load %arg4[%c0_9, %c0_10] : memref<128x32xbf16, #tpu.memory_space<vmem>>, vector<128x32xbf16>
    %cst_11 = arith.constant dense<0.000000e+00> : vector<16x32xf32>
    %17 = tpu.matmul %15, %16, %cst_11 {dimension_numbers = #tpu.dot_dimension_numbers<[1], [0], [0], [1], [0, 0, 1, 1], [], []>} : vector<16x128xbf16>, vector<128x32xbf16>, vector<16x32xf32> -> vector<16x32xf32>
    %18 = arith.addf %14, %17 : vector<16x32xf32>
    %c0_12 = arith.constant 0 : index
    %c0_13 = arith.constant 0 : index
    %19 = vector.load %arg6[%c0_12, %c0_13] : memref<16x32xf32, #tpu.memory_space<vmem>>, vector<16x32xf32>
    tpu.vector_store %arg6[%c0_12, %c0_13], %18 {strides = array<i32>} : memref<16x32xf32, #tpu.memory_space<vmem>>, vector<16x32xf32>,
    %c0_i32_14 = arith.constant 0 : i32
    %20 = arith.cmpi eq, %arg1, %c0_i32_14 : i32
    %21 = arith.extui %20 : i1 to i32
    %c0_i32_15 = arith.constant 0 : i32
    %22 = arith.cmpi ne, %21, %c0_i32_15 : i32
    scf.if %22 {
      %c0_16 = arith.constant 0 : index
      %c0_17 = arith.constant 0 : index
      %23 = vector.load %arg6[%c0_16, %c0_17] : memref<16x32xf32, #tpu.memory_space<vmem>>, vector<16x32xf32>
      %c0_18 = arith.constant 0 : index
      %c0_19 = arith.constant 0 : index
      %24 = vector.load %arg5[%c0_18, %c0_19] : memref<16x32xf32, #tpu.memory_space<vmem>>, vector<16x32xf32>
      tpu.vector_store %arg5[%c0_18, %c0_19], %23 {strides = array<i32>} : memref<16x32xf32, #tpu.memory_space<vmem>>, vector<16x32xf32>,
    } else {
    }
    return
  }
  func.func @transform_0(%arg0: i32, %arg1: i32) -> (i32, i32) {
    %c0_i32 = arith.constant 0 : i32
    %c0_i32_0 = arith.constant 0 : i32
    return %arg0, %c0_i32 : i32, i32
  }
  func.func @transform_1(%arg0: i32, %arg1: i32) -> (i32, i32) {
    %c0_i32 = arith.constant 0 : i32
    %c0_i32_0 = arith.constant 0 : i32
    return %c0_i32, %arg1 : i32, i32
  }
  func.func @transform_2(%arg0: i32, %arg1: i32) -> (i32, i32) {
    %c0_i32 = arith.constant 0 : i32
    %c0_i32_0 = arith.constant 0 : i32
    return %arg1, %c0_i32 : i32, i32
  }
  func.func @transform_3(%arg0: i32, %arg1: i32) -> (i32, i32) {
    %c0_i32 = arith.constant 0 : i32
    %c0_i32_0 = arith.constant 0 : i32
    return %arg0, %c0_i32 : i32, i32
  }
}

</mosaic_0001>

<bundles_post_ra>
// kernel: tpu_custom_call.1
= control target key start
LH: loop header
LB: loop body
LE: loop exit
PB: predicated region body
PF: predicated region fallthrough
CT: control target
= control target key end

     0   :  { %v332_v1 = vmov 0.0   ;;  %vm333_vm0 = vmmov 0   ;;  %vm20_vm1 = vcmask 261120   ;;  %s409_s0 = inlined_call_operand.vmem [shape: bf16[16,32], index: 0, kind: input, shape index: {}]   ;;  %s410_s1 = inlined_call_operand.vmem [shape: bf16[32,128], index: 1, kind: input, shape index: {}]   ;;  %s411_s2 = inlined_call_operand.vmem [shape: bf16[128,32], index: 2, kind: input, shape index: {}]   ;;  %s412_s3 = inlined_call_operand.hbm [shape: f32[16,32], index: 3, kind: output, shape index: {}]  }
   0x1   :  { %v293_v0 = vld [vmem:[%s410_s1] sm:$0xff]   ;;  %260 = vmatprep.subr.bf16.mxu0 %v332_v1  ;;  %268 = vmatprep.subr.bf16.mxu1 %v332_v1  ;;  %v294_v2 = vld [vmem:[%s410_s1 + $0x8] sm:$0xff]   ;;  %21 = vst.msk [vmem:[#allocation2] sm:$0xff] %vm20_vm1, %v332_v1  ;;  %22 = vst.msk [vmem:[#allocation2 + $0x8] sm:$0xff] %vm20_vm1, %v332_v1 }
   0x2   :  { %261 = vmatpush3.bf16.msra.mxu0 %v293_v0  ;;  %264 = vmatprep.mubr.msk.bf16.mxu0 %vm333_vm0, %v332_v1  ;;  %v296_v3 = vld [vmem:[%s411_s2] sm:$0xff]   ;;  %v297_v5 = vld [vmem:[%s411_s2 + $0x8] sm:$0xff]   ;;  %v298_v6 = vld [vmem:[%s411_s2 + $0x10] sm:$0xff]  }
   0x3   :  { %262 = vmatprep.subr.bf16.mxu0 %v332_v1  ;;  %284 = vmatprep.mubr.msk.bf16.mxu1 %vm333_vm0, %v332_v1  ;;  %v295_v4 = vld [vmem:[%s409_s0] sm:$0xff]  }
   0x4   :  { %269 = vmatpush3.bf16.msra.mxu1 %v296_v3 }
   0x5   :  { %270 = vmatprep.subr.bf16.mxu1 %v332_v1 }
   0x6   :  { %263 = vmatpush3.bf16.msra.mxu0 %v294_v2 }
   0x8   :  { %271 = vmatpush3.bf16.msra.mxu1 %v297_v5 }
   0x9   :  { %265 = vmatmul.mubr.msk.bf16.vlgmr.msra.gmra.mrb[0].mxu0 %vm20_vm1, %v295_v4 }
   0xa   :  { %8 = vsyncpa [#allocation4], 0  ;;  %272 = vmatprep.subr.bf16.mxu1 %v332_v1  ;;  %v299_v7 = vld [vmem:[%s411_s2 + $0x18] sm:$0xff]   ;;  %v300_v8 = vld [vmem:[%s411_s2 + $0x20] sm:$0xff]  }
   0xb   :  { %v301_v9 = vld [vmem:[%s411_s2 + $0x28] sm:$0xff]   ;;  %v302_v10 = vld [vmem:[%s411_s2 + $0x30] sm:$0xff]   ;;  %v303_v11 = vld [vmem:[%s411_s2 + $0x38] sm:$0xff]   ;;  %s334_s2 = smov [#allocation3]  }
   0xc   :  { %273 = vmatpush3.bf16.msra.mxu1 %v298_v6  ;;  %v101_v27 = vld [vmem:[#allocation2] sm:$0xff]  ;;  %v102_v29 = vld [vmem:[#allocation2 + $0x8] sm:$0xff]  ;;  %s225_s5 = sshll.u32 %s334_s2, 4  ;;  %s226_s5 = int_to_ptr.vmem [resolvable:$true] %s225_s5 }
   0xd   :  { %274 = vmatprep.subr.bf16.mxu1 %v332_v1  ;;  %s308_s6 = scalar_lea.vmem %s226_s5, 256  ;;  %p313_p1 = scmp.lt.s32.totalorder %s226_s5, %s226_s5 }
   0xe   :  { %p309_p0 = scmp.ne.s32.totalorder %s226_s5, %s308_s6  ;;  %p314_p2 = scmp.lt.s32.totalorder %s308_s6, %s308_s6 }
  0x10   :  { %275 = vmatpush3.bf16.msra.mxu1 %v299_v7  ;;  %p315_p3 = por %p314_p2, %p313_p1 }
  0x11   :  { %276 = vmatprep.subr.bf16.mxu1 %v332_v1 }
  0x12   :  { %p316_p4 = pnand %p315_p3, %p309_p0 }
  0x14   :  { %277 = vmatpush3.bf16.msra.mxu1 %v300_v8 }
  0x15   :  { %278 = vmatprep.subr.bf16.mxu1 %v332_v1 }
  0x18   :  { %279 = vmatpush3.bf16.msra.mxu1 %v301_v9 }
  0x19   :  { %280 = vmatprep.subr.bf16.mxu1 %v332_v1 }
  0x1c   :  { %281 = vmatpush3.bf16.msra.mxu1 %v302_v10 }
  0x1d   :  { %282 = vmatprep.subr.bf16.mxu1 %v332_v1 }
  0x20   :  { %283 = vmatpush3.bf16.msra.mxu1 %v303_v11 }
  0xdc   :  { %v84_v12 = vpop.f32.mrb[0].mxu0 }
  0xdd   :  { %v93_v13 = vmul.f32 0.70710677, %v84_v12  ;;  %v266_v14 = vpop.f32.mrb[1].mxu0  ;;  %v91_v21 = vmul.f32 0.5, %v84_v12 }
  0xde   :  { %v87_v15 = vpop.f32.mrb[2].mxu0 }
  0xdf   :  { %304 = verf.f32 %v93_v13  ;;  %v94_v16 = vmul.f32 0.70710677, %v87_v15  ;;  %v267_v17 = vpop.f32.mrb[3].mxu0  ;;  %v92_v22 = vmul.f32 0.5, %v87_v15 }
  0xe1   :  { %306 = verf.f32 %v94_v16 }
  0xe9   :  { %v305_v18 = vpop.eup %304 }
  0xea   :  { %v97_v19 = vadd.f32 1.0, %v305_v18 }
  0xeb   :  { %v307_v20 = vpop.eup %306 }
  0xec   :  { %v98_v23 = vadd.f32 1.0, %v307_v20  ;;  %v99_v24 = vmul.f32 %v97_v19, %v91_v21 }
  0xee   :  { %v100_v25 = vmul.f32 %v98_v23, %v92_v22 }
  0xf0   :  { %v103_v26 = vpack.c.bf16 %v100_v25, %v99_v24 }
  0xf2   :  { %285 = vmatmul.mubr.bf16.vlgmr.msra.gmra.mrb[0].mxu1 %v103_v26 }
 0x1c5   :  { %v202_v28 = vpop.f32.mrb[0].mxu1 }
 0x1c6   :  { %v209_v30 = vadd.f32 %v202_v28, %v101_v27  ;;  %v286_v31 = vpop.f32.mrb[1].mxu1 }
 0x1c7   :  { %v205_v32 = vpop.f32.mrb[2].mxu1 }
 0x1c8   :  { %211 = vst.msk [vmem:[#allocation2] sm:$0xff] %vm20_vm1, %v209_v30  ;;  %v210_v33 = vadd.f32 %v205_v32, %v102_v29  ;;  %v287_v34 = vpop.f32.mrb[3].mxu1 }
 0x1ca   :  { %212 = vst.msk [vmem:[#allocation2 + $0x8] sm:$0xff] %vm20_vm1, %v210_v33 }
 0x1cf   :  { %v216_v35 = vld [vmem:[#allocation2] sm:$0xff] }
 0x1d0   :  { %218 = vst.msk [vmem:[#allocation3] sm:$0xff] %vm20_vm1, %v216_v35 }
 0x1d1   :  { %v217_v36 = vld [vmem:[#allocation2 + $0x8] sm:$0xff] }
 0x1d2   :  { %219 = vst.msk [vmem:[#allocation3 + $0x8] sm:$0xff] %vm20_vm1, %v217_v36 }
 0x1d3   :  { %319 = shalt.err (!%p316_p4)
}
 0x1d4   :  { %s320_s9 = scalar_lea.hbm %s412_s3, 256 }
 0x1d5   :  { %p321_p5 = scmp.ne.s32.totalorder %s412_s3, %s320_s9  ;;  %p324_p6 = scmp.lt.u32.totalorder %s320_s9, %s412_s3 }
 0x1d7   :  { %p326_p7 = pnand %p324_p6, %p321_p5 }
 0x1d9   :  { %329 = shalt.err (!%p326_p7)
}
 0x1da   :  { %s335_s14 = smov 128   ;;  %s336_s15 = smov 8  }
 0x1db   :  { %231 = dma.vmem_to_hbm [thread:$0]  %s226_s5, 256, %s412_s3, [#allocation4], %s335_s14, %s335_s14, %s336_s15  }
 0x1dc   :  { %330 = dma.done.wait [#allocation4], 256  }
 0x1dd   :  { %331 = vsyncadd [#allocation4], 4294967040 }
 0x1de   :  { %235 = vsyncpa [#allocation4], 1 }

</bundles_post_ra>
